<compile_context>
chip_gen: v5e
topology: v5e:2x2
jax: 0.10.0
libtpu: 0.0.40
codegen_flags: <defaults>
</compile_context>

<pallas_src>
import jax
import jax.numpy as jnp
from jax.experimental import pallas as pl
from jax.experimental.pallas import tpu as pltpu

IN_DIM = 28 * 28      # 784
HID = 64
OUT_DIM = 10

# Lane-padded (multiple-of-128) shapes used inside the kernel.
IN_PAD = 896          # 7 * 128
HID_PAD = 128
OUT_PAD = 128

# bf16 x tile: 2048*896*2 B = 3.5 MiB; x2 double-buffered + out tile + weights
# stays well under the 32 MiB scoped-VMEM default on every generation (v7x-safe).
MAX_TILE_B = 2048


def _round_up(n, m):
    return ((n + m - 1) // m) * m


def mlp_kernel(x_ref, w1_ref, b1_ref, w2_ref, b2_ref, w3_ref, b3_ref, o_ref):
    """Fused 3-layer MLP for one batch tile. All matmuls hit the MXU with f32
    accumulation; bias-add / ReLU run in f32 on the VPU (v5e has no bf16 VPU)."""
    x = x_ref[...]                                                # (TILE_B, IN_PAD) bf16

    h1 = jnp.dot(x, w1_ref[...], preferred_element_type=jnp.float32) + b1_ref[...]
    h1 = jnp.maximum(h1, 0.0).astype(jnp.bfloat16)

    h2 = jnp.dot(h1, w2_ref[...], preferred_element_type=jnp.float32) + b2_ref[...]
    h2 = jnp.maximum(h2, 0.0).astype(jnp.bfloat16)

    out = jnp.dot(h2, w3_ref[...], preferred_element_type=jnp.float32) + b3_ref[...]
    o_ref[...] = out.astype(o_ref.dtype)


def _pad_params(params):
    """Zero-pad weights/biases to lane-dense shapes; weights in bf16, biases f32."""
    w1, b1, w2, b2, w3, b3 = params
    w1p = jnp.zeros((IN_PAD, HID_PAD), jnp.bfloat16).at[:IN_DIM, :HID].set(
        w1.astype(jnp.bfloat16))
    w2p = jnp.zeros((HID_PAD, HID_PAD), jnp.bfloat16).at[:HID, :HID].set(
        w2.astype(jnp.bfloat16))
    w3p = jnp.zeros((HID_PAD, OUT_PAD), jnp.bfloat16).at[:HID, :OUT_DIM].set(
        w3.astype(jnp.bfloat16))
    b1p = jnp.zeros((1, HID_PAD), jnp.float32).at[:, :HID].set(b1.astype(jnp.float32))
    b2p = jnp.zeros((1, HID_PAD), jnp.float32).at[:, :HID].set(b2.astype(jnp.float32))
    b3p = jnp.zeros((1, OUT_PAD), jnp.float32).at[:, :OUT_DIM].set(b3.astype(jnp.float32))
    return w1p, b1p, w2p, b2p, w3p, b3p


def mlp_forward(x_nchw, params):
    """x_nchw: (B, C, H, W) with C*H*W == 784. Returns (B, 10) float32."""
    B = x_nchw.shape[0]
    x2d = x_nchw.reshape(B, -1)                     # nn.Flatten (row-major, matches PyTorch)
    assert x2d.shape[1] == IN_DIM

    # Batch tile: multiple of 16 (bf16 sublane tile), capped at MAX_TILE_B.
    tile_b = min(MAX_TILE_B, _round_up(B, 16))
    b_pad = _round_up(B, tile_b)

    # Pad batch + feature dims with zeros; stream activations in bf16.
    x_pad = jnp.zeros((b_pad, IN_PAD), jnp.bfloat16).at[:B, :IN_DIM].set(
        x2d.astype(jnp.bfloat16))

    w1p, b1p, w2p, b2p, w3p, b3p = _pad_params(params)

    grid = (b_pad // tile_b,)
    flops = 2 * b_pad * (IN_PAD * HID_PAD + HID_PAD * HID_PAD + HID_PAD * OUT_PAD)
    bytes_accessed = (x_pad.size * 2 + b_pad * OUT_PAD * 4
                      + (w1p.size + w2p.size + w3p.size) * 2
                      + (b1p.size + b2p.size + b3p.size) * 4)

    out_pad = pl.pallas_call(
        mlp_kernel,
        out_shape=jax.ShapeDtypeStruct((b_pad, OUT_PAD), jnp.float32),
        grid=grid,
        in_specs=[
            pl.BlockSpec((tile_b, IN_PAD), lambda i: (i, 0)),     # x: tiled over batch
            pl.BlockSpec((IN_PAD, HID_PAD), lambda i: (0, 0)),    # weights/biases: resident
            pl.BlockSpec((1, HID_PAD), lambda i: (0, 0)),
            pl.BlockSpec((HID_PAD, HID_PAD), lambda i: (0, 0)),
            pl.BlockSpec((1, HID_PAD), lambda i: (0, 0)),
            pl.BlockSpec((HID_PAD, OUT_PAD), lambda i: (0, 0)),
            pl.BlockSpec((1, OUT_PAD), lambda i: (0, 0)),
        ],
        out_specs=pl.BlockSpec((tile_b, OUT_PAD), lambda i: (i, 0)),
        compiler_params=pltpu.CompilerParams(
            dimension_semantics=("parallel",)),
        cost_estimate=pl.CostEstimate(
            flops=flops, transcendentals=0, bytes_accessed=bytes_accessed),
    )(x_pad, w1p, b1p, w2p, b2p, w3p, b3p)

    return out_pad[:B, :OUT_DIM]


def init_params(key):
    """PyTorch nn.Linear default init (U[-1/sqrt(fan_in), +1/sqrt(fan_in)]).
    Weights stored as (in, out) so the kernel does x @ W directly."""
    ks = jax.random.split(key, 6)

    def linear(kw, kb, fan_in, fan_out):
        bound = 1.0 / (fan_in ** 0.5)
        w = jax.random.uniform(kw, (fan_in, fan_out), jnp.float32, -bound, bound)
        b = jax.random.uniform(kb, (1, fan_out), jnp.float32, -bound, bound)
        return w, b

    w1, b1 = linear(ks[0], ks[1], IN_DIM, HID)
    w2, b2 = linear(ks[2], ks[3], HID, HID)
    w3, b3 = linear(ks[4], ks[5], HID, OUT_DIM)
    return (w1, b1, w2, b2, w3, b3)


def ref_forward(x_nchw, params):
    """Pure-JAX reference replicating the kernel's bf16 quantization steps."""
    w1, b1, w2, b2, w3, b3 = params
    bf = lambda a: a.astype(jnp.bfloat16).astype(jnp.float32)
    x2d = bf(x_nchw.reshape(x_nchw.shape[0], -1))
    h1 = bf(jnp.maximum(x2d @ bf(w1) + b1, 0.0))
    h2 = bf(jnp.maximum(h1 @ bf(w2) + b2, 0.0))
    return h2 @ bf(w3) + b3


if __name__ == "__main__":
    key = jax.random.PRNGKey(0)
    k_x, k_p = jax.random.split(key)

    # Small batch of MNIST-like inputs: NCHW (2, 1, 28, 28) -> flatten -> 784.
    x = jax.random.normal(k_x, (2, 1, 28, 28), dtype=jnp.float32)
    params = init_params(k_p)

    out = mlp_forward(x, params)
    out = jax.block_until_ready(out)

    ref = ref_forward(x, params)
    assert out.shape == (2, 10)
    assert jnp.allclose(out, ref, atol=1e-2, rtol=1e-2), (
        f"max abs err = {jnp.max(jnp.abs(out - ref))}")

    print("KERNEL_OK")
</pallas_src>

<mosaic_0001>
module attributes {stable_mosaic.version = 11 : i64} {
  func.func @mlp_kernel(%arg0: i32, %arg1: memref<16x896xbf16, #tpu.memory_space<vmem>>, %arg2: memref<896x128xbf16, #tpu.memory_space<vmem>>, %arg3: memref<1x128xf32, #tpu.memory_space<vmem>>, %arg4: memref<128x128xbf16, #tpu.memory_space<vmem>>, %arg5: memref<1x128xf32, #tpu.memory_space<vmem>>, %arg6: memref<128x128xbf16, #tpu.memory_space<vmem>>, %arg7: memref<1x128xf32, #tpu.memory_space<vmem>>, %arg8: memref<16x128xf32, #tpu.memory_space<vmem>>) attributes {dimension_semantics = [#tpu.dimension_semantics<parallel>], iteration_bounds = array<i64: 1>, scalar_prefetch = 0 : i64, scratch_operands = 0 : i64, tpu.core_type = #tpu.core_type<tc>, window_params = [{transform_indices = @transform_0, window_bounds = array<i64: 16, 896>}, {pipeline_mode = #tpu.pipeline_mode<synchronous>, transform_indices = @transform_1, window_bounds = array<i64: 896, 128>}, {pipeline_mode = #tpu.pipeline_mode<synchronous>, transform_indices = @transform_2, window_bounds = array<i64: 1, 128>}, {pipeline_mode = #tpu.pipeline_mode<synchronous>, transform_indices = @transform_3, window_bounds = array<i64: 128, 128>}, {pipeline_mode = #tpu.pipeline_mode<synchronous>, transform_indices = @transform_4, window_bounds = array<i64: 1, 128>}, {pipeline_mode = #tpu.pipeline_mode<synchronous>, transform_indices = @transform_5, window_bounds = array<i64: 128, 128>}, {pipeline_mode = #tpu.pipeline_mode<synchronous>, transform_indices = @transform_6, window_bounds = array<i64: 1, 128>}, {transform_indices = @transform_7, window_bounds = array<i64: 16, 128>}]} {
    %c0 = arith.constant 0 : index
    %c0_0 = arith.constant 0 : index
    %0 = vector.load %arg1[%c0, %c0_0] : memref<16x896xbf16, #tpu.memory_space<vmem>>, vector<16x896xbf16>
    %c0_1 = arith.constant 0 : index
    %c0_2 = arith.constant 0 : index
    %1 = vector.load %arg2[%c0_1, %c0_2] : memref<896x128xbf16, #tpu.memory_space<vmem>>, vector<896x128xbf16>
    %cst = arith.constant dense<0.000000e+00> : vector<16x128xf32>
    %2 = tpu.matmul %0, %1, %cst {dimension_numbers = #tpu.dot_dimension_numbers<[1], [0], [0], [1], [0, 0, 1, 1], [], []>} : vector<16x896xbf16>, vector<896x128xbf16>, vector<16x128xf32> -> vector<16x128xf32>
    %c0_3 = arith.constant 0 : index
    %c0_4 = arith.constant 0 : index
    %3 = vector.load %arg3[%c0_3, %c0_4] : memref<1x128xf32, #tpu.memory_space<vmem>>, vector<1x128xf32>
    %4 = vector.broadcast %3 : vector<1x128xf32> to vector<16x128xf32>
    %5 = arith.addf %2, %4 : vector<16x128xf32>
    %cst_5 = arith.constant 0.000000e+00 : f32
    %6 = vector.broadcast %cst_5 : f32 to vector<16x128xf32>
    %7 = arith.maximumf %5, %6 : vector<16x128xf32>
    %8 = arith.truncf %7 : vector<16x128xf32> to vector<16x128xbf16>
    %c0_6 = arith.constant 0 : index
    %c0_7 = arith.constant 0 : index
    %9 = vector.load %arg4[%c0_6, %c0_7] : memref<128x128xbf16, #tpu.memory_space<vmem>>, vector<128x128xbf16>
    %cst_8 = arith.constant dense<0.000000e+00> : vector<16x128xf32>
    %10 = tpu.matmul %8, %9, %cst_8 {dimension_numbers = #tpu.dot_dimension_numbers<[1], [0], [0], [1], [0, 0, 1, 1], [], []>} : vector<16x128xbf16>, vector<128x128xbf16>, vector<16x128xf32> -> vector<16x128xf32>
    %c0_9 = arith.constant 0 : index
    %c0_10 = arith.constant 0 : index
    %11 = vector.load %arg5[%c0_9, %c0_10] : memref<1x128xf32, #tpu.memory_space<vmem>>, vector<1x128xf32>
    %12 = vector.broadcast %11 : vector<1x128xf32> to vector<16x128xf32>
    %13 = arith.addf %10, %12 : vector<16x128xf32>
    %cst_11 = arith.constant 0.000000e+00 : f32
    %14 = vector.broadcast %cst_11 : f32 to vector<16x128xf32>
    %15 = arith.maximumf %13, %14 : vector<16x128xf32>
    %16 = arith.truncf %15 : vector<16x128xf32> to vector<16x128xbf16>
    %c0_12 = arith.constant 0 : index
    %c0_13 = arith.constant 0 : index
    %17 = vector.load %arg6[%c0_12, %c0_13] : memref<128x128xbf16, #tpu.memory_space<vmem>>, vector<128x128xbf16>
    %cst_14 = arith.constant dense<0.000000e+00> : vector<16x128xf32>
    %18 = tpu.matmul %16, %17, %cst_14 {dimension_numbers = #tpu.dot_dimension_numbers<[1], [0], [0], [1], [0, 0, 1, 1], [], []>} : vector<16x128xbf16>, vector<128x128xbf16>, vector<16x128xf32> -> vector<16x128xf32>
    %c0_15 = arith.constant 0 : index
    %c0_16 = arith.constant 0 : index
    %19 = vector.load %arg7[%c0_15, %c0_16] : memref<1x128xf32, #tpu.memory_space<vmem>>, vector<1x128xf32>
    %20 = vector.broadcast %19 : vector<1x128xf32> to vector<16x128xf32>
    %21 = arith.addf %18, %20 : vector<16x128xf32>
    %c0_17 = arith.constant 0 : index
    %c0_18 = arith.constant 0 : index
    %22 = vector.load %arg8[%c0_17, %c0_18] : memref<16x128xf32, #tpu.memory_space<vmem>>, vector<16x128xf32>
    tpu.vector_store %arg8[%c0_17, %c0_18], %21 {strides = array<i32>} : memref<16x128xf32, #tpu.memory_space<vmem>>, vector<16x128xf32>,
    return
  }
  func.func @transform_0(%arg0: i32) -> (i32, i32) {
    %c0_i32 = arith.constant 0 : i32
    %c0_i32_0 = arith.constant 0 : i32
    return %arg0, %c0_i32 : i32, i32
  }
  func.func @transform_1(%arg0: i32) -> (i32, i32) {
    %c0_i32 = arith.constant 0 : i32
    %c0_i32_0 = arith.constant 0 : i32
    %c0_i32_1 = arith.constant 0 : i32
    return %c0_i32, %c0_i32_0 : i32, i32
  }
  func.func @transform_2(%arg0: i32) -> (i32, i32) {
    %c0_i32 = arith.constant 0 : i32
    %c0_i32_0 = arith.constant 0 : i32
    %c0_i32_1 = arith.constant 0 : i32
    return %c0_i32, %c0_i32_0 : i32, i32
  }
  func.func @transform_3(%arg0: i32) -> (i32, i32) {
    %c0_i32 = arith.constant 0 : i32
    %c0_i32_0 = arith.constant 0 : i32
    %c0_i32_1 = arith.constant 0 : i32
    return %c0_i32, %c0_i32_0 : i32, i32
  }
  func.func @transform_4(%arg0: i32) -> (i32, i32) {
    %c0_i32 = arith.constant 0 : i32
    %c0_i32_0 = arith.constant 0 : i32
    %c0_i32_1 = arith.constant 0 : i32
    return %c0_i32, %c0_i32_0 : i32, i32
  }
  func.func @transform_5(%arg0: i32) -> (i32, i32) {
    %c0_i32 = arith.constant 0 : i32
    %c0_i32_0 = arith.constant 0 : i32
    %c0_i32_1 = arith.constant 0 : i32
    return %c0_i32, %c0_i32_0 : i32, i32
  }
  func.func @transform_6(%arg0: i32) -> (i32, i32) {
    %c0_i32 = arith.constant 0 : i32
    %c0_i32_0 = arith.constant 0 : i32
    %c0_i32_1 = arith.constant 0 : i32
    return %c0_i32, %c0_i32_0 : i32, i32
  }
  func.func @transform_7(%arg0: i32) -> (i32, i32) {
    %c0_i32 = arith.constant 0 : i32
    %c0_i32_0 = arith.constant 0 : i32
    return %arg0, %c0_i32 : i32, i32
  }
}

</mosaic_0001>

<bundles_post_ra>
// kernel: tpu_custom_call.1
= control target key start
LH: loop header
LB: loop body
LE: loop exit
PB: predicated region body
PF: predicated region fallthrough
CT: control target
= control target key end

     0   :  { %12 = vsyncpa [#allocation3], 0  ;;  %s1489_s0 = inlined_call_operand.hbm [shape: bf16[16,896], index: 0, kind: input, shape index: {}]   ;;  %s1490_s1 = inlined_call_operand.hbm [shape: bf16[896,128], index: 1, kind: input, shape index: {}]   ;;  %s1491_s2 = inlined_call_operand.vmem [shape: f32[1,128], index: 2, kind: input, shape index: {}]   ;;  %s1492_s3 = inlined_call_operand.hbm [shape: bf16[128,128], index: 3, kind: input, shape index: {}]   ;;  %s1493_s4 = inlined_call_operand.vmem [shape: f32[1,128], index: 4, kind: input, shape index: {}]   ;;  %s1494_s5 = inlined_call_operand.hbm [shape: bf16[128,128], index: 5, kind: input, shape index: {}]   ;;  %s1495_s6 = inlined_call_operand.vmem [shape: f32[1,128], index: 6, kind: input, shape index: {}]   ;;  %s1496_s7 = inlined_call_operand.hbm [shape: f32[16,128], index: 7, kind: output, shape index: {}]  }
   0x1   :  { %13 = vsyncpa [#allocation6], 0 }
   0x2   :  { %14 = vsyncpa [#allocation9], 0  ;;  %s33_s26 = sshll.u32 %s1490_s1, 4  ;;  %s34_s26 = int_to_ptr.hbm [resolvable:$true] %s33_s26 }
   0x3   :  { %15 = vsyncpa [#allocation4], 0  ;;  %s1414_s27 = smov [#allocation5]   ;;  %s20_s8 = sshll.u32 %s1489_s0, 4  ;;  %s21_s8 = int_to_ptr.hbm [resolvable:$true] %s20_s8 }
   0x4   :  { %s35_s28 = sshll.u32 %s1414_s27, 4  ;;  %s1415_s9 = smov 64   ;;  %s36_s28 = int_to_ptr.vmem [resolvable:$true] %s35_s28 }
   0x5   :  { %s1416_s10 = smov 4   ;;  %s1417_s11 = smov [#allocation2]  }
   0x6   :  { %41 = dma.hbm_to_vmem [thread:$0]  %s34_s26, 7168, %s36_s28, [#allocation6], %s1415_s9, %s1415_s9, %s1416_s10  }
   0x7   :  { %s22_s12 = sshll.u32 %s1417_s11, 4  ;;  %s1418_s13 = smov 448   ;;  %s23_s12 = int_to_ptr.vmem [resolvable:$true] %s22_s12 }
   0x8   :  { %s1419_s14 = smov 28   ;;  %s48_s16 = sshll.u32 %s1492_s3, 4  ;;  %s49_s16 = int_to_ptr.hbm [resolvable:$true] %s48_s16 }
   0x9   :  { %28 = dma.hbm_to_vmem [thread:$0]  %s21_s8, 896, %s23_s12, [#allocation3], %s1418_s13, %s1418_s13, %s1419_s14  }
   0xa   :  { %s1420_s17 = smov [#allocation7]   ;;  %s63_s20 = sshll.u32 %s1494_s5, 4  ;;  %s64_s20 = int_to_ptr.hbm [resolvable:$true] %s63_s20 }
   0xb   :  { %s50_s18 = sshll.u32 %s1420_s17, 4  ;;  %s1421_s21 = smov [#allocation8]   ;;  %s51_s18 = int_to_ptr.vmem [resolvable:$true] %s50_s18 }
   0xc   :  { %56 = dma.hbm_to_vmem [thread:$0]  %s49_s16, 1024, %s51_s18, [#allocation6], %s1415_s9, %s1415_s9, %s1416_s10  }
   0xd   :  { %s65_s22 = sshll.u32 %s1421_s21, 4  ;;  %s66_s22 = int_to_ptr.vmem [resolvable:$true] %s65_s22 }
   0xe   :  { %71 = dma.hbm_to_vmem [thread:$0]  %s64_s20, 1024, %s66_s22, [#allocation9], %s1415_s9, %s1415_s9, %s1416_s10  }
   0xf   :  { %1406 = dma.done.wait [#allocation3], 896  }
  0x10   :  { %1407 = vsyncadd [#allocation3], 4294966400 }
  0x11   :  { %1408 = dma.done.wait [#allocation6], 8192  }
  0x12   :  { %1409 = vsyncadd [#allocation6], 4294959104 }
  0x13   :  { %1410 = dma.done.wait [#allocation9], 1024  }
  0x14   :  { %1411 = vsyncadd [#allocation9], 4294966272  ;;  %v1207_v0 = vld [vmem:[#allocation5 + $0x38] sm:$0xff]  ;;  %v1206_v3 = vld [vmem:[#allocation5 + $0x30] sm:$0xff]  ;;  %s1422_s26 = smov [#allocation10]   ;;  %s1423_s30 = smov 128  }
  0x15   :  { %v1215_v1 = vld [vmem:[#allocation5 + $0x78] sm:$0xff]  ;;  %586 = vmatpush.bf16.msra.mxu0 %v1207_v0  ;;  %v1214_v4 = vld [vmem:[#allocation5 + $0x70] sm:$0xff]  ;;  %v1205_v8 = vld [vmem:[#allocation5 + $0x28] sm:$0xff]  ;;  %s860_s27 = sshll.u32 %s1422_s26, 4  ;;  %s1424_s8 = smov 8   ;;  %s861_s27 = int_to_ptr.vmem [resolvable:$true] %s860_s27 }
  0x16   :  { %v1223_v2 = vld [vmem:[#allocation5 + $0xb8] sm:$0xff]  ;;  %600 = vmatpush.bf16.msra.mxu1 %v1215_v1  ;;  %v1222_v6 = vld [vmem:[#allocation5 + $0xb0] sm:$0xff]  ;;  %v1213_v9 = vld [vmem:[#allocation5 + $0x68] sm:$0xff] }
  0x17   :  { %v1231_v5 = vld [vmem:[#allocation5 + $0xf8] sm:$0xff]  ;;  %614 = vmatpush.bf16.msra.mxu2 %v1223_v2  ;;  %v1230_v7 = vld [vmem:[#allocation5 + $0xf0] sm:$0xff]  ;;  %v1221_v10 = vld [vmem:[#allocation5 + $0xa8] sm:$0xff] }
  0x18   :  { %628 = vmatpush.bf16.msra.mxu3 %v1231_v5  ;;  %v1229_v11 = vld [vmem:[#allocation5 + $0xe8] sm:$0xff]  ;;  %v1204_v12 = vld [vmem:[#allocation5 + $0x20] sm:$0xff]  ;;  %v1203_v16 = vld [vmem:[#allocation5 + $0x18] sm:$0xff] }
  0x19   :  { %587 = vmatpush.bf16.msra.mxu0 %v1206_v3  ;;  %v1212_v13 = vld [vmem:[#allocation5 + $0x60] sm:$0xff]  ;;  %v1211_v17 = vld [vmem:[#allocation5 + $0x58] sm:$0xff]  ;;  %v1202_v20 = vld [vmem:[#allocation5 + $0x10] sm:$0xff] }
  0x1a   :  { %601 = vmatpush.bf16.msra.mxu1 %v1214_v4  ;;  %v1220_v14 = vld [vmem:[#allocation5 + $0xa0] sm:$0xff]  ;;  %v1219_v18 = vld [vmem:[#allocation5 + $0x98] sm:$0xff]  ;;  %v1210_v21 = vld [vmem:[#allocation5 + $0x50] sm:$0xff] }
  0x1b   :  { %615 = vmatpush.bf16.msra.mxu2 %v1222_v6  ;;  %v1228_v15 = vld [vmem:[#allocation5 + $0xe0] sm:$0xff]  ;;  %v1227_v19 = vld [vmem:[#allocation5 + $0xd8] sm:$0xff]  ;;  %v1218_v22 = vld [vmem:[#allocation5 + $0x90] sm:$0xff] }
  0x1c   :  { %629 = vmatpush.bf16.msra.mxu3 %v1230_v7  ;;  %v1226_v23 = vld [vmem:[#allocation5 + $0xd0] sm:$0xff]  ;;  %v1201_v24 = vld [vmem:[#allocation5 + $0x8] sm:$0xff]  ;;  %v1200_v27 = vld [vmem:[#allocation5] sm:$0xff] }
  0x1d   :  { %588 = vmatpush.bf16.msra.mxu0 %v1205_v8  ;;  %v1209_v25 = vld [vmem:[#allocation5 + $0x48] sm:$0xff]  ;;  %v1208_v29 = vld [vmem:[#allocation5 + $0x40] sm:$0xff]  ;;  %v1239_v31 = vld [vmem:[#allocation5 + $0x138] sm:$0xff] }
  0x1e   :  { %602 = vmatpush.bf16.msra.mxu1 %v1213_v9  ;;  %v1217_v26 = vld [vmem:[#allocation5 + $0x88] sm:$0xff]  ;;  %v1216_v30 = vld [vmem:[#allocation5 + $0x80] sm:$0xff]  ;;  %v887_v32 = vld [vmem:[#allocation2 + $0x8] sm:$0xf] }
  0x1f   :  { %616 = vmatpush.bf16.msra.mxu2 %v1221_v10  ;;  %v1225_v28 = vld [vmem:[#allocation5 + $0xc8] sm:$0xff]  ;;  %v1196_v34 = vld [vmem:[#allocation2 + $0x18] sm:$0xf0]  ;;  %v1247_v38 = vld [vmem:[#allocation5 + $0x178] sm:$0xff] }
  0x20   :  { %630 = vmatpush.bf16.msra.mxu3 %v1229_v11  ;;  %v879_v33 = vld [vmem:[#allocation2] sm:$0xf]  ;;  %v1197_v35 = vld [vmem:[#allocation2 + $0x20] sm:$0xf0]  ;;  %v1255_v39 = vld [vmem:[#allocation5 + $0x1b8] sm:$0xff] }
  0x21   :  { %589 = vmatpush.bf16.msra.mxu0 %v1204_v12  ;;  %v1193_v36 = vld [vmem:[#allocation2 + $0x4] sm:$0xf]  ;;  %v881_v37 = vld [vmem:[#allocation2 + $0x1c] sm:$0xf0]  ;;  %v1224_v40 = vld [vmem:[#allocation5 + $0xc0] sm:$0xff]  ;;  %v880_v41 = vor.u32 %v1196_v34, %v879_v33  ;;  %v888_v42 = vor.u32 %v1197_v35, %v887_v32 }
  0x22   :  { %603 = vmatpush.bf16.msra.mxu1 %v1212_v13  ;;  %v1194_v43 = vld [vmem:[#allocation2 + $0xc] sm:$0xf]  ;;  %v889_v44 = vld [vmem:[#allocation2 + $0x24] sm:$0xf0]  ;;  %v884_v45 = vor.u32 %v1193_v36, %v881_v37  ;;  %v1237_v50 = vld [vmem:[#allocation5 + $0x128] sm:$0xff] }
  0x23   :  { %617 = vmatpush.bf16.msra.mxu2 %v1220_v14  ;;  %v1238_v46 = vld [vmem:[#allocation5 + $0x130] sm:$0xff]  ;;  %v892_v49 = vor.u32 %v1194_v43, %v889_v44  ;;  %v1245_v51 = vld [vmem:[#allocation5 + $0x168] sm:$0xff]  ;;  %v1236_v53 = vld [vmem:[#allocation5 + $0x120] sm:$0xff] }
  0x24   :  { %631 = vmatpush.bf16.msra.mxu3 %v1228_v15  ;;  %v1246_v47 = vld [vmem:[#allocation5 + $0x170] sm:$0xff]  ;;  %v1253_v52 = vld [vmem:[#allocation5 + $0x1a8] sm:$0xff]  ;;  %v1244_v54 = vld [vmem:[#allocation5 + $0x160] sm:$0xff] }
  0x25   :  { %590 = vmatpush.bf16.msra.mxu0 %v1203_v16  ;;  %v1254_v48 = vld [vmem:[#allocation5 + $0x1b0] sm:$0xff]  ;;  %v1252_v55 = vld [vmem:[#allocation5 + $0x1a0] sm:$0xff]  ;;  %v1235_v56 = vld [vmem:[#allocation5 + $0x118] sm:$0xff] }
  0x26   :  { %604 = vmatpush.bf16.msra.mxu1 %v1211_v17  ;;  %v1243_v57 = vld [vmem:[#allocation5 + $0x158] sm:$0xff]  ;;  %v1234_v59 = vld [vmem:[#allocation5 + $0x110] sm:$0xff]  ;;  %v1233_v62 = vld [vmem:[#allocation5 + $0x108] sm:$0xff] }
  0x27   :  { %618 = vmatpush.bf16.msra.mxu2 %v1219_v18  ;;  %v1251_v58 = vld [vmem:[#allocation5 + $0x198] sm:$0xff]  ;;  %v1242_v60 = vld [vmem:[#allocation5 + $0x150] sm:$0xff]  ;;  %v1241_v63 = vld [vmem:[#allocation5 + $0x148] sm:$0xff] }
  0x28   :  { %632 = vmatpush.bf16.msra.mxu3 %v1227_v19  ;;  %v1250_v61 = vld [vmem:[#allocation5 + $0x190] sm:$0xff]  ;;  %v1249_v0 = vld [vmem:[#allocation5 + $0x188] sm:$0xff]  ;;  %v1232_v1 = vld [vmem:[#allocation5 + $0x100] sm:$0xff] }
  0x29   :  { %591 = vmatpush.bf16.msra.mxu0 %v1202_v20  ;;  %v1240_v2 = vld [vmem:[#allocation5 + $0x140] sm:$0xff]  ;;  %v895_v4 = vld [vmem:[#allocation2 + $0x10] sm:$0xf]  ;;  %v1198_v5 = vld [vmem:[#allocation2 + $0x28] sm:$0xf0] }
  0x2a   :  { %605 = vmatpush.bf16.msra.mxu1 %v1210_v21  ;;  %v1248_v3 = vld [vmem:[#allocation5 + $0x180] sm:$0xff]  ;;  %v1195_v6 = vld [vmem:[#allocation2 + $0x14] sm:$0xf]  ;;  %v897_v7 = vld [vmem:[#allocation2 + $0x2c] sm:$0xf0]  ;;  %v896_v10 = vor.u32 %v1198_v5, %v895_v4 }
  0x2b   :  { %619 = vmatpush.bf16.msra.mxu2 %v1218_v22  ;;  %v903_v8 = vld [vmem:[#allocation2 + $0x18] sm:$0xf]  ;;  %v1199_v9 = vld [vmem:[#allocation2 + $0x30] sm:$0xf0]  ;;  %v900_v11 = vor.u32 %v1195_v6, %v897_v7  ;;  %v1262_v14 = vld [vmem:[#allocation7 + $0x30] sm:$0xff] }
  0x2c   :  { %633 = vmatpush.bf16.msra.mxu3 %v1226_v23  ;;  %v904_v12 = vor.u32 %v1199_v9, %v903_v8  ;;  %v1263_v13 = vld [vmem:[#allocation7 + $0x38] sm:$0xff]  ;;  %v1261_v15 = vld [vmem:[#allocation7 + $0x28] sm:$0xff]  ;;  %v1260_v16 = vld [vmem:[#allocation7 + $0x20] sm:$0xff] }
  0x2d   :  { %592 = vmatpush.bf16.msra.mxu0 %v1201_v24  ;;  %v1259_v17 = vld [vmem:[#allocation7 + $0x18] sm:$0xff]  ;;  %v1258_v18 = vld [vmem:[#allocation7 + $0x10] sm:$0xff]  ;;  %v1257_v19 = vld [vmem:[#allocation7 + $0x8] sm:$0xff] }
  0x2e   :  { %606 = vmatpush.bf16.msra.mxu1 %v1209_v25  ;;  %v1256_v22 = vld [vmem:[#allocation7] sm:$0xff]  ;;  %v1283_v24 = vld [vmem:[%s1491_s2] ss:$0 sm:$0xff]  ;;  %v1271_v25 = vld [vmem:[#allocation8 + $0x38] sm:$0xff] }
  0x2f   :  { %620 = vmatpush.bf16.msra.mxu2 %v1217_v26  ;;  %v1269_v32 = vld [vmem:[#allocation8 + $0x28] sm:$0xff]  ;;  %v1268_v37 = vld [vmem:[#allocation8 + $0x20] sm:$0xff] }
  0x30   :  { %634 = vmatpush.bf16.msra.mxu3 %v1225_v28  ;;  %v1285_v5 = vld [vmem:[%s1495_s6] ss:$0 sm:$0xff] }
  0x31   :  { %593 = vmatpush.bf16.msra.mxu0 %v1200_v27  ;;  %v1270_v27 = vld [vmem:[#allocation8 + $0x30] sm:$0xff] }
  0x32   :  { %607 = vmatpush.bf16.msra.mxu1 %v1208_v29 }
  0x33   :  { %621 = vmatpush.bf16.msra.mxu2 %v1216_v30 }
  0x34   :  { %635 = vmatpush.bf16.msra.mxu3 %v1224_v40  ;;  %594 = vmatmul.bf16.vlgmr.msra.gmra.mxu0 %v880_v41 }
  0x35   :  { %642 = vmatpush.bf16.msrb.mxu0 %v1239_v31  ;;  %608 = vmatmul.bf16.vlgmr.msra.gmra.mxu1 %v884_v45 }
  0x36   :  { %656 = vmatpush.bf16.msrb.mxu1 %v1247_v38  ;;  %622 = vmatmul.bf16.vlgmr.msra.gmra.mxu2 %v888_v42 }
  0x37   :  { %670 = vmatpush.bf16.msrb.mxu2 %v1255_v39  ;;  %636 = vmatmul.bf16.vlgmr.msra.gmra.mxu3 %v892_v49 }
  0x38   :  { %755 = vmatpush.bf16.msrb.mxu3 %v1263_v13 }
  0x39   :  { %643 = vmatpush.bf16.msrb.mxu0 %v1238_v46 }
  0x3a   :  { %657 = vmatpush.bf16.msrb.mxu1 %v1246_v47 }
  0x3b   :  { %671 = vmatpush.bf16.msrb.mxu2 %v1254_v48 }
  0x3c   :  { %756 = vmatpush.bf16.msrb.mxu3 %v1262_v14 }
  0x3d   :  { %644 = vmatpush.bf16.msrb.mxu0 %v1237_v50 }
  0x3e   :  { %658 = vmatpush.bf16.msrb.mxu1 %v1245_v51 }
  0x3f   :  { %672 = vmatpush.bf16.msrb.mxu2 %v1253_v52 }
  0x40   :  { %757 = vmatpush.bf16.msrb.mxu3 %v1261_v15 }
  0x41   :  { %645 = vmatpush.bf16.msrb.mxu0 %v1236_v53 }
  0x42   :  { %659 = vmatpush.bf16.msrb.mxu1 %v1244_v54 }
  0x43   :  { %673 = vmatpush.bf16.msrb.mxu2 %v1252_v55 }
  0x44   :  { %758 = vmatpush.bf16.msrb.mxu3 %v1260_v16 }
  0x45   :  { %646 = vmatpush.bf16.msrb.mxu0 %v1235_v56 }
  0x46   :  { %660 = vmatpush.bf16.msrb.mxu1 %v1243_v57  ;;  %v1267_v57 = vld [vmem:[#allocation8 + $0x18] sm:$0xff] }
  0x47   :  { %674 = vmatpush.bf16.msrb.mxu2 %v1251_v58  ;;  %v1266_v58 = vld [vmem:[#allocation8 + $0x10] sm:$0xff] }
  0x48   :  { %759 = vmatpush.bf16.msrb.mxu3 %v1259_v17 }
  0x49   :  { %647 = vmatpush.bf16.msrb.mxu0 %v1234_v59  ;;  %v1265_v59 = vld [vmem:[#allocation8 + $0x8] sm:$0xff] }
  0x4a   :  { %661 = vmatpush.bf16.msrb.mxu1 %v1242_v60  ;;  %v1264_v60 = vld [vmem:[#allocation8] sm:$0xff] }
  0x4b   :  { %675 = vmatpush.bf16.msrb.mxu2 %v1250_v61 }
  0x4c   :  { %760 = vmatpush.bf16.msrb.mxu3 %v1258_v18 }
  0x4d   :  { %648 = vmatpush.bf16.msrb.mxu0 %v1233_v62  ;;  %v1284_v62 = vld [vmem:[%s1493_s4] ss:$0 sm:$0xff]  ;;  %s862_s4 = sshll.u32 %s1496_s7, 4  ;;  %s863_s4 = int_to_ptr.hbm [resolvable:$true] %s862_s4 }
  0x4e   :  { %662 = vmatpush.bf16.msrb.mxu1 %v1241_v63 }
  0x4f   :  { %676 = vmatpush.bf16.msrb.mxu2 %v1249_v0 }
  0x50   :  { %761 = vmatpush.bf16.msrb.mxu3 %v1257_v19 }
  0x51   :  { %649 = vmatpush.bf16.msrb.mxu0 %v1232_v1 }
  0x52   :  { %663 = vmatpush.bf16.msrb.mxu1 %v1240_v2 }
  0x53   :  { %677 = vmatpush.bf16.msrb.mxu2 %v1248_v3 }
  0x54   :  { %650 = vmatmul.bf16.vlgmr.msrb.gmra.mxu0 %v896_v10  ;;  %762 = vmatpush.bf16.msrb.mxu3 %v1256_v22 }
  0x55   :  { %664 = vmatmul.bf16.vlgmr.msrb.gmra.mxu1 %v900_v11  ;;  %840 = vmatpush.bf16.msra.mxu0 %v1271_v25 }
  0x56   :  { %678 = vmatmul.bf16.vlgmr.msrb.gmra.mxu2 %v904_v12 }
  0x59   :  { %841 = vmatpush.bf16.msra.mxu0 %v1270_v27 }
  0x5d   :  { %842 = vmatpush.bf16.msra.mxu0 %v1269_v32 }
  0x61   :  { %843 = vmatpush.bf16.msra.mxu0 %v1268_v37 }
  0x65   :  { %844 = vmatpush.bf16.msra.mxu0 %v1267_v57 }
  0x69   :  { %845 = vmatpush.bf16.msra.mxu0 %v1266_v58 }
  0x6d   :  { %846 = vmatpush.bf16.msra.mxu0 %v1265_v59 }
  0x71   :  { %847 = vmatpush.bf16.msra.mxu0 %v1264_v60 }
  0xb1   :  { %v595_v20 = vpop.f32.mrf.mxu0 }
  0xb2   :  { %v609_v21 = vpop.f32.mrf.mxu1  ;;  %v596_v28 = vadd.f32 %v1283_v24, %v595_v20 }
  0xb4   :  { %v610_v33 = vadd.f32 %v609_v21, %v596_v28 }
  0xb9   :  { %v623_v23 = vpop.f32.mrf.mxu2  ;;  %v597_v26 = vpop.f32.mrf.mxu0 }
  0xba   :  { %v637_v29 = vpop.f32.mrf.mxu3  ;;  %v611_v30 = vpop.f32.mrf.mxu1  ;;  %v598_v31 = vadd.f32 %v1283_v24, %v597_v26  ;;  %v624_v38 = vadd.f32 %v623_v23, %v610_v33 }
  0xbc   :  { %v612_v35 = vadd.f32 %v611_v30, %v598_v31  ;;  %v638_v42 = vadd.f32 %v637_v29, %v624_v38 }
  0xc1   :  { %v625_v34 = vpop.f32.mrf.mxu2 }
  0xc2   :  { %v626_v40 = vadd.f32 %v625_v34, %v612_v35  ;;  %v639_v41 = vpop.f32.mrf.mxu3 }
  0xc4   :  { %v640_v44 = vadd.f32 %v639_v41, %v626_v40 }
  0xd1   :  { %v651_v36 = vpop.f32.mrf.mxu0 }
  0xd2   :  { %v665_v39 = vpop.f32.mrf.mxu1  ;;  %v652_v45 = vadd.f32 %v651_v36, %v638_v42 }
  0xd4   :  { %v666_v48 = vadd.f32 %v665_v39, %v652_v45 }
  0xd9   :  { %v679_v43 = vpop.f32.mrf.mxu2  ;;  %v653_v46 = vpop.f32.mrf.mxu0 }
  0xda   :  { %v654_v47 = vadd.f32 %v653_v46, %v640_v44  ;;  %v667_v49 = vpop.f32.mrf.mxu1  ;;  %v680_v50 = vadd.f32 %v679_v43, %v666_v48 }
  0xdc   :  { %v668_v51 = vadd.f32 %v667_v49, %v654_v47  ;;  %v684_v54 = vmax.f32 %v680_v50, 0.0 }
  0xe1   :  { %v681_v52 = vpop.f32.mrf.mxu2 }
  0xe2   :  { %v682_v53 = vadd.f32 %v681_v52, %v668_v51 }
  0xe4   :  { %v685_v55 = vmax.f32 %v682_v53, 0.0 }
  0xe6   :  { %v686_v56 = vpack.c.bf16 %v685_v55, %v684_v54 }
  0xe8   :  { %763 = vmatmul.bf16.vlgmr.msrb.gmra.mxu3 %v686_v56 }
 0x16b   :  { %v764_v61 = vpop.f32.mrf.mxu3 }
 0x16c   :  { %v765_v63 = vadd.f32 %v1284_v62, %v764_v61 }
 0x16e   :  { %v769_v2 = vmax.f32 %v765_v63, 0.0 }
 0x173   :  { %v766_v0 = vpop.f32.mrf.mxu3 }
 0x174   :  { %v767_v1 = vadd.f32 %v1284_v62, %v766_v0 }
 0x176   :  { %v770_v3 = vmax.f32 %v767_v1, 0.0 }
 0x178   :  { %v771_v4 = vpack.c.bf16 %v770_v3, %v769_v2 }
 0x17a   :  { %848 = vmatmul.bf16.vlgmr.msra.gmra.mxu0 %v771_v4 }
 0x1f7   :  { %v849_v6 = vpop.f32.mrf.mxu0 }
 0x1f8   :  { %v850_v7 = vadd.f32 %v1285_v5, %v849_v6 }
 0x1fa   :  { %854 = vst [vmem:[#allocation10] sm:$0xff] %v850_v7 }
 0x1ff   :  { %v851_v8 = vpop.f32.mrf.mxu0 }
 0x200   :  { %v852_v9 = vadd.f32 %v1285_v5, %v851_v8 }
 0x202   :  { %855 = vst [vmem:[#allocation10 + $0x8] sm:$0xff] %v852_v9 }
 0x203   :  { %868 = dma.vmem_to_hbm [thread:$0]  %s861_s27, 256, %s863_s4, [#allocation4], %s1423_s30, %s1423_s30, %s1424_s8  }
 0x204   :  { %1412 = dma.done.wait [#allocation4], 256  }
 0x205   :  { %1413 = vsyncadd [#allocation4], 4294967040 }
 0x206   :  { %873 = vsyncpa [#allocation3], 1 }
 0x207   :  { %874 = vsyncpa [#allocation6], 1 }
 0x208   :  { %875 = vsyncpa [#allocation9], 1 }
 0x209   :  { %876 = vsyncpa [#allocation4], 1 }

</bundles_post_ra>
